<compile_context>
chip_gen: v6e
topology: v6e:2x2x1
jax: 0.10.0
libtpu: 0.0.40
codegen_flags: <defaults>
</compile_context>

<pallas_src>
import functools
from typing import NamedTuple

import jax
import jax.numpy as jnp
from jax.experimental import pallas as pl
from jax.experimental.pallas import tpu as pltpu


def _round_up(n, m):
    return ((n + m - 1) // m) * m


@functools.lru_cache(maxsize=1)
def _vmem_capacity_bytes():
    """Per-core VMEM capacity; conservative 64 MiB fallback (v7x per-TC)."""
    try:
        return int(pltpu.get_tpu_info().vmem_capacity_bytes)
    except Exception:
        return 64 << 20


# ----------------------------------------------------------------------------
# Kernels
# ----------------------------------------------------------------------------

def _ffn_step(x_ref, w1_ref, wg_ref, w2_ref, acc_ref):
    # x_ref:  (tm, d_model)
    # w1_ref: (d_model, tf)   slice of W1^T   (NN layout)
    # wg_ref: (d_model, tf)   slice of Wg^T   (gated only)
    # w2_ref: (tf, d_model)   slice of W2^T   (NN layout)
    # acc_ref:(tm, d_model)   fp32 accumulator (scratch or the output ref)
    h = jnp.dot(x_ref[...], w1_ref[...], preferred_element_type=jnp.float32)
    g = jnp.maximum(h, 0.0)                       # ReLU on this tf slice (exact)
    if wg_ref is not None:
        g = g * jnp.dot(x_ref[...], wg_ref[...],
                        preferred_element_type=jnp.float32)
    acc_ref[...] += jnp.dot(g.astype(w2_ref.dtype), w2_ref[...],
                            preferred_element_type=jnp.float32)


# fp32 output: accumulate directly into the resident output block.
def _kernel_inplace(x_ref, w1_ref, w2_ref, o_ref):
    @pl.when(pl.program_id(1) == 0)
    def _init():
        o_ref[...] = jnp.zeros_like(o_ref)
    _ffn_step(x_ref, w1_ref, None, w2_ref, o_ref)


def _kernel_gated_inplace(x_ref, w1_ref, wg_ref, w2_ref, o_ref):
    @pl.when(pl.program_id(1) == 0)
    def _init():
        o_ref[...] = jnp.zeros_like(o_ref)
    _ffn_step(x_ref, w1_ref, wg_ref, w2_ref, o_ref)


# non-fp32 output: fp32 scratch accumulator, cast + store on last k step.
def _kernel_scratch(x_ref, w1_ref, w2_ref, o_ref, acc_ref):
    k = pl.program_id(1)

    @pl.when(k == 0)
    def _init():
        acc_ref[...] = jnp.zeros_like(acc_ref)

    _ffn_step(x_ref, w1_ref, None, w2_ref, acc_ref)

    @pl.when(k == pl.num_programs(1) - 1)
    def _store():
        o_ref[...] = acc_ref[...].astype(o_ref.dtype)


def _kernel_gated_scratch(x_ref, w1_ref, wg_ref, w2_ref, o_ref, acc_ref):
    k = pl.program_id(1)

    @pl.when(k == 0)
    def _init():
        acc_ref[...] = jnp.zeros_like(acc_ref)

    _ffn_step(x_ref, w1_ref, wg_ref, w2_ref, acc_ref)

    @pl.when(k == pl.num_programs(1) - 1)
    def _store():
        o_ref[...] = acc_ref[...].astype(o_ref.dtype)


# ----------------------------------------------------------------------------
# Tile selection (device-/dtype-/shape-aware)
# ----------------------------------------------------------------------------

def _vmem_need(tm, tf, d_model, xb, wb, n_up, use_scratch):
    need = 2 * tm * d_model * xb                    # x tiles (double buffered)
    need += 2 * tm * d_model * xb                   # out tiles
    need += 2 * (n_up + 1) * d_model * tf * wb      # W1 (+Wg) and W2 tiles
    if use_scratch:
        need += tm * d_model * 4                    # fp32 accumulator
    need += (n_up + 1) * tm * tf * 4                # live (tm,tf) fp32 temps
    return need


def _tf_candidates(d_ff):
    # Largest first; prefer >= 256 (full MXU width on v6e/v7x), 128 last resort.
    cands = [c for c in (1024, 896, 768, 640, 512, 384, 256, 128)
             if c <= d_ff and d_ff % c == 0]
    if not cands:
        cands = [d_ff]          # tf == full d_ff (single reduction step)
    return cands


def _tm_candidates(M, sub):
    if M <= 256:
        return [_round_up(M, sub)]
    # Large tm first (weight reuse), but keep >= 2 blocks on the parallel
    # axis so both v7x TensorCores get work.
    cands = [tm for tm in (1024, 768, 640, 512, 384, 256) if 2 * tm <= M]
    if not cands:
        cands = [_round_up((M + 1) // 2, sub)]
    return cands


def _select_tiles(M, d_model, d_ff, xb, wb, n_up, use_scratch, sub, budget,
                  tm_user, tf_user):
    tms = [tm_user] if tm_user is not None else _tm_candidates(M, sub)
    tfs = [tf_user] if tf_user is not None else _tf_candidates(d_ff)
    for tm in tms:
        for tf in tfs:
            if _vmem_need(tm, tf, d_model, xb, wb, n_up, use_scratch) <= budget:
                return tm, tf
    return tms[-1], tfs[-1]


# ----------------------------------------------------------------------------
# pallas_call wrapper
# ----------------------------------------------------------------------------

class _Cfg(NamedTuple):
    is_gated: bool
    tm: int
    tf: int
    vmem_limit: int
    use_scratch: bool


@functools.partial(jax.jit, static_argnames=("cfg",))
def _ffn_impl(x2d, w1_t, w2_t, wg_t, *, cfg):
    M, d_model = x2d.shape
    d_ff = w1_t.shape[1]
    tm, tf = cfg.tm, cfg.tf

    M_pad = _round_up(M, tm)
    if M_pad != M:
        # Zero rows give zero outputs; sliced off below.
        x2d = jnp.pad(x2d, ((0, M_pad - M), (0, 0)))

    grid = (M_pad // tm, d_ff // tf)

    x_spec = pl.BlockSpec((tm, d_model), lambda i, k: (i, 0))
    o_spec = pl.BlockSpec((tm, d_model), lambda i, k: (i, 0))
    w1_spec = pl.BlockSpec((d_model, tf), lambda i, k: (0, k))
    w2_spec = pl.BlockSpec((tf, d_model), lambda i, k: (k, 0))

    xb = jnp.dtype(x2d.dtype).itemsize
    wb = jnp.dtype(w1_t.dtype).itemsize
    n_row_blocks = grid[0]
    w_bytes = (w1_t.size + w2_t.size
               + (wg_t.size if wg_t is not None else 0)) * wb
    # Weights are re-streamed once per row block; x and out move once.
    bytes_accessed = 2 * M_pad * d_model * xb + w_bytes * n_row_blocks
    flops = 2 * M_pad * d_model * d_ff * (3 if cfg.is_gated else 2)
    cost = pl.CostEstimate(flops=flops, transcendentals=0,
                           bytes_accessed=bytes_accessed)

    cparams = pltpu.CompilerParams(
        dimension_semantics=("parallel", "arbitrary"),
        vmem_limit_bytes=cfg.vmem_limit)

    out_shape = jax.ShapeDtypeStruct((M_pad, d_model), x2d.dtype)
    scratch = [] if not cfg.use_scratch else [pltpu.VMEM((tm, d_model),
                                                         jnp.float32)]

    if cfg.is_gated:
        kernel = _kernel_gated_scratch if cfg.use_scratch else _kernel_gated_inplace
        in_specs = [x_spec, w1_spec, w1_spec, w2_spec]
        args = (x2d, w1_t, wg_t, w2_t)
    else:
        kernel = _kernel_scratch if cfg.use_scratch else _kernel_inplace
        in_specs = [x_spec, w1_spec, w2_spec]
        args = (x2d, w1_t, w2_t)

    out2d = pl.pallas_call(
        kernel,
        out_shape=out_shape,
        grid=grid,
        in_specs=in_specs,
        out_specs=o_spec,
        scratch_shapes=scratch,
        compiler_params=cparams,
        cost_estimate=cost,
    )(*args)

    if M_pad != M:
        out2d = out2d[:M]
    return out2d


def feed_forward(x, w1, w2, w_gate=None, *, is_gated=False, tm=None, tf=None):
    """Pallas FeedForward forward pass.

    x:      (B, T, d_model)
    w1:     (d_ff, d_model)   layer1.weight (PyTorch layout, bias=False)
    w2:     (d_model, d_ff)   layer2.weight
    w_gate: (d_ff, d_model)   linear_gate.weight (only if is_gated)
    """
    B, T, d_model = x.shape
    d_ff, d_in = w1.shape
    assert d_in == d_model
    assert w2.shape == (d_model, d_ff)
    if is_gated:
        assert w_gate is not None and w_gate.shape == (d_ff, d_model)
    M = B * T

    xb = jnp.dtype(x.dtype).itemsize
    wb = jnp.dtype(w1.dtype).itemsize
    sub = 16 if xb == 2 else 8                   # sublane tile of the row axis
    n_up = 2 if is_gated else 1
    use_scratch = jnp.dtype(x.dtype) != jnp.dtype(jnp.float32)

    vmem_cap = _vmem_capacity_bytes()
    budget = int(vmem_cap * 0.75)
    tm_sel, tf_sel = _select_tiles(M, d_model, d_ff, xb, wb, n_up, use_scratch,
                                   sub, budget, tm, tf)
    assert tm_sel % sub == 0, "tm must be a multiple of the sublane tile"
    assert d_ff % tf_sel == 0 and (tf_sel % 128 == 0 or tf_sel == d_ff)

    need = _vmem_need(tm_sel, tf_sel, d_model, xb, wb, n_up, use_scratch)
    vmem_limit = int(min(max(need + need // 4 + (2 << 20), 32 << 20),
                         int(vmem_cap * 0.85)))

    cfg = _Cfg(is_gated=bool(is_gated), tm=int(tm_sel), tf=int(tf_sel),
               vmem_limit=int(vmem_limit), use_scratch=bool(use_scratch))

    x2d = x.reshape(M, d_model)
    # Pre-transpose weights ONCE, outside the hot loop, into NN matmul layout:
    #   w1_t, wg_t: (d_model, d_ff);  w2_t: (d_ff, d_model).
    w1_t = w1.T
    w2_t = w2.T
    wg_t = w_gate.T if is_gated else None

    out2d = _ffn_impl(x2d, w1_t, w2_t, wg_t, cfg=cfg)
    return out2d.reshape(B, T, d_model)


def feed_forward_ref(x, w1, w2, w_gate=None, *, is_gated=False):
    g = jnp.maximum(jnp.einsum("btd,fd->btf", x, w1), 0.0)
    if is_gated:
        g = g * jnp.einsum("btd,fd->btf", x, w_gate)
    return jnp.einsum("btf,df->btd", g, w2)


if __name__ == "__main__":
    # Small shapes consistent with the module: (batch, seq, d_model).
    B, T, d_model, d_ff = 2, 8, 32, 512

    key = jax.random.PRNGKey(0)
    kx, k1, k2, kg = jax.random.split(key, 4)

    x = jax.random.normal(kx, (B, T, d_model), dtype=jnp.float32)
    # nn.Linear weights (out_features, in_features), bias=False (module default).
    w1 = jax.random.normal(k1, (d_ff, d_model), jnp.float32) * (d_model ** -0.5)
    w2 = jax.random.normal(k2, (d_model, d_ff), jnp.float32) * (d_ff ** -0.5)
    w_gate = jax.random.normal(kg, (d_ff, d_model), jnp.float32) * (d_model ** -0.5)

    # 1) Non-gated fp32, tf=256 -> 2 reduction steps (accumulate-in-output path).
    out = jax.block_until_ready(feed_forward(x, w1, w2, is_gated=False, tf=256))
    ref = feed_forward_ref(x, w1, w2, is_gated=False)
    assert out.shape == (B, T, d_model)
    assert jnp.allclose(out, ref, atol=1e-4, rtol=1e-4)

    # 2) Default (device-aware) tile selection.
    out_d = jax.block_until_ready(feed_forward(x, w1, w2, is_gated=False))
    assert jnp.allclose(out_d, ref, atol=1e-4, rtol=1e-4)

    # 3) Gated fp32.
    out_g = jax.block_until_ready(
        feed_forward(x, w1, w2, w_gate, is_gated=True, tf=256))
    ref_g = feed_forward_ref(x, w1, w2, w_gate, is_gated=True)
    assert jnp.allclose(out_g, ref_g, atol=1e-4, rtol=1e-4)

    # 4) Row count not tile-aligned -> exercises zero-padding path.
    x_odd = jax.random.normal(kx, (B, 10, d_model), dtype=jnp.float32)
    out_odd = jax.block_until_ready(feed_forward(x_odd, w1, w2, is_gated=False,
                                                 tf=256))
    ref_odd = feed_forward_ref(x_odd, w1, w2, is_gated=False)
    assert out_odd.shape == (B, 10, d_model)
    assert jnp.allclose(out_odd, ref_odd, atol=1e-4, rtol=1e-4)

    # 5) bf16 weights/activations (MXU-native, fp32 scratch accumulator path).
    xb16, w1b, w2b = (a.astype(jnp.bfloat16) for a in (x, w1, w2))
    out_b = jax.block_until_ready(feed_forward(xb16, w1b, w2b, is_gated=False,
                                               tf=256))
    ref_b = feed_forward_ref(xb16.astype(jnp.float32), w1b.astype(jnp.float32),
                             w2b.astype(jnp.float32), is_gated=False)
    assert jnp.allclose(out_b.astype(jnp.float32), ref_b, atol=1e-1, rtol=1e-1)

    print("KERNEL_OK")
</pallas_src>

<mosaic_0001>
module attributes {stable_mosaic.version = 11 : i64} {
  func.func @_kernel_inplace(%arg0: i32, %arg1: i32, %arg2: memref<16x32xf32, #tpu.memory_space<vmem>>, %arg3: memref<32x256xf32, #tpu.memory_space<vmem>>, %arg4: memref<256x32xf32, #tpu.memory_space<vmem>>, %arg5: memref<16x32xf32, #tpu.memory_space<vmem>>) attributes {dimension_semantics = [#tpu.dimension_semantics<parallel>, #tpu.dimension_semantics<arbitrary>], iteration_bounds = array<i64: 1, 2>, scalar_prefetch = 0 : i64, scratch_operands = 0 : i64, tpu.core_type = #tpu.core_type<tc>, window_params = [{transform_indices = @transform_0, window_bounds = array<i64: 16, 32>}, {transform_indices = @transform_1, window_bounds = array<i64: 32, 256>}, {transform_indices = @transform_2, window_bounds = array<i64: 256, 32>}, {transform_indices = @transform_3, window_bounds = array<i64: 16, 32>}]} {
    %c0_i32 = arith.constant 0 : i32
    %0 = arith.cmpi eq, %arg1, %c0_i32 : i32
    %1 = arith.extui %0 : i1 to i32
    %c0_i32_0 = arith.constant 0 : i32
    %2 = arith.cmpi ne, %1, %c0_i32_0 : i32
    scf.if %2 {
      %cst_12 = arith.constant 0.000000e+00 : f32
      %13 = vector.broadcast %cst_12 : f32 to vector<16x32xf32>
      %c0_13 = arith.constant 0 : index
      %c0_14 = arith.constant 0 : index
      %14 = vector.load %arg5[%c0_13, %c0_14] : memref<16x32xf32, #tpu.memory_space<vmem>>, vector<16x32xf32>
      tpu.vector_store %arg5[%c0_13, %c0_14], %13 {strides = array<i32>} : memref<16x32xf32, #tpu.memory_space<vmem>>, vector<16x32xf32>,
    } else {
    }
    %c0 = arith.constant 0 : index
    %c0_1 = arith.constant 0 : index
    %3 = vector.load %arg2[%c0, %c0_1] : memref<16x32xf32, #tpu.memory_space<vmem>>, vector<16x32xf32>
    %c0_2 = arith.constant 0 : index
    %c0_3 = arith.constant 0 : index
    %4 = vector.load %arg3[%c0_2, %c0_3] : memref<32x256xf32, #tpu.memory_space<vmem>>, vector<32x256xf32>
    %cst = arith.constant dense<0.000000e+00> : vector<16x256xf32>
    %5 = tpu.matmul %3, %4, %cst {dimension_numbers = #tpu.dot_dimension_numbers<[1], [0], [0], [1], [0, 0, 1, 1], [], []>} : vector<16x32xf32>, vector<32x256xf32>, vector<16x256xf32> -> vector<16x256xf32>
    %cst_4 = arith.constant 0.000000e+00 : f32
    %6 = vector.broadcast %cst_4 : f32 to vector<16x256xf32>
    %7 = arith.maximumf %5, %6 : vector<16x256xf32>
    %c0_5 = arith.constant 0 : index
    %c0_6 = arith.constant 0 : index
    %8 = vector.load %arg5[%c0_5, %c0_6] : memref<16x32xf32, #tpu.memory_space<vmem>>, vector<16x32xf32>
    %c0_7 = arith.constant 0 : index
    %c0_8 = arith.constant 0 : index
    %9 = vector.load %arg4[%c0_7, %c0_8] : memref<256x32xf32, #tpu.memory_space<vmem>>, vector<256x32xf32>
    %cst_9 = arith.constant dense<0.000000e+00> : vector<16x32xf32>
    %10 = tpu.matmul %7, %9, %cst_9 {dimension_numbers = #tpu.dot_dimension_numbers<[1], [0], [0], [1], [0, 0, 1, 1], [], []>} : vector<16x256xf32>, vector<256x32xf32>, vector<16x32xf32> -> vector<16x32xf32>
    %11 = arith.addf %8, %10 : vector<16x32xf32>
    %c0_10 = arith.constant 0 : index
    %c0_11 = arith.constant 0 : index
    %12 = vector.load %arg5[%c0_10, %c0_11] : memref<16x32xf32, #tpu.memory_space<vmem>>, vector<16x32xf32>
    tpu.vector_store %arg5[%c0_10, %c0_11], %11 {strides = array<i32>} : memref<16x32xf32, #tpu.memory_space<vmem>>, vector<16x32xf32>,
    return
  }
  func.func @transform_0(%arg0: i32, %arg1: i32) -> (i32, i32) {
    %c0_i32 = arith.constant 0 : i32
    %c0_i32_0 = arith.constant 0 : i32
    return %arg0, %c0_i32 : i32, i32
  }
  func.func @transform_1(%arg0: i32, %arg1: i32) -> (i32, i32) {
    %c0_i32 = arith.constant 0 : i32
    %c0_i32_0 = arith.constant 0 : i32
    return %c0_i32, %arg1 : i32, i32
  }
  func.func @transform_2(%arg0: i32, %arg1: i32) -> (i32, i32) {
    %c0_i32 = arith.constant 0 : i32
    %c0_i32_0 = arith.constant 0 : i32
    return %arg1, %c0_i32 : i32, i32
  }
  func.func @transform_3(%arg0: i32, %arg1: i32) -> (i32, i32) {
    %c0_i32 = arith.constant 0 : i32
    %c0_i32_0 = arith.constant 0 : i32
    return %arg0, %c0_i32 : i32, i32
  }
}

</mosaic_0001>

<bundles_post_ra>
// kernel: _ffn_impl.1
= control target key start
LH: loop header
LB: loop body
LE: loop exit
PB: predicated region body
PF: predicated region fallthrough
CT: control target
= control target key end

     0   :  { %8 = vsyncpa [#allocation4], 0  ;;  %s768_s12 = smov 0   ;;  %s770_s13 = smov 0   ;;  %s896_s0 = inlined_call_operand.vmem [shape: f32[16,32], index: 0, kind: input, shape index: {}]   ;;  %s897_s1 = inlined_call_operand.vmem [shape: f32[32,512], index: 1, kind: input, shape index: {}]   ;;  %s898_s2 = inlined_call_operand.vmem [shape: f32[512,32], index: 2, kind: input, shape index: {}]   ;;  %s899_s3 = inlined_call_operand.hbm [shape: f32[16,32], index: 3, kind: output, shape index: {}]  }
   0x1   :  { %s772_s14 = smov 0   ;;  %s774_s15 = smov 0  }
   0x2   :  { %s776_s16 = smov 0  }
   0x3 LB: > { %s567_s17 = sadd.s32 4294967295, %s741_s16   ;;  %s23_s18 = sadd.s32 1, %s737_s15  ;;  %s741_s16 = sphi %s776_s16, %s14_s16   ;;  %s737_s15 = sphi %s774_s15, %s904_s15   ;;  %s733_s14 = sphi %s772_s14, %s903_s14   ;;  %s729_s13 = sphi %s770_s13, %s902_s13   ;;  %s725_s12 = sphi %s768_s12, %s901_s12  }
   0x4   : > { %p24_p0 = scmp.ge.s32.totalorder %s23_s18, 2  ;;  %p66_p1 = scmp.ne.s32.totalorder %s729_s13, %s725_s12 }
   0x5   : > { %p67_p2 = scmp.eq.s32.totalorder %s741_s16, 0  ;;  %s59_s20 = sadd.s32 1, %s729_s13 }
   0x6   : > { %s906_s18 = smov (%p24_p0, %s23_s18), 0  ;;  %p570_p5 = scmp.ge.s32.totalorder %s741_s16, 2 }
   0x7   : > { %p68_p3 = por %p67_p2, %p66_p1  ;;  %s56_s19 = ssub.s32 %s737_s15, %s906_s18 }
   0x8   : > { %p57_p4 = scmp.eq.s32.totalorder %s56_s19, 0  ;;  %153 = sbr.rel (%p570_p5) target bundleno = 21 (0x15), region = 20 }
   0xa   : > { %s804_s21 = scalar_select %p57_p4, %s729_s13, %s59_s20  }
   0xd   : > { %156 = sbr.rel (!%p68_p3) target bundleno = 21 (0x15), region = 24  ;;  %s158_s22 = sand.u32 (%p68_p3), 1, %s729_s13  }
   0xe   : > { %s585_s23 = sshll.u32 (%p68_p3), %s737_s15, 4  ;;  %s571_s24 = sshll.u32 (%p68_p3), %s158_s22, 6 }
   0xf   : > { %s163_s27 = scalar_lea.vmem (%p68_p3), %s897_s1, %s585_s23  ;;  %s160_s28 = scalar_lea.vmem (%p68_p3), [#allocation2], %s571_s24 }
  0x10   : > { %v176_v0 = vld [vmem:[%s163_s27] sm:$0xff] (%p68_p3)  ;;  %v178_v1 = vld [vmem:[%s163_s27 + $0x8] sm:$0xff] (%p68_p3) }
  0x11   : > { %v180_v2 = vld [vmem:[%s163_s27 + $0x20] sm:$0xff] (%p68_p3)  ;;  %177 = vst [vmem:[%s160_s28] sm:$0xff] (%p68_p3), %v176_v0  ;;  %179 = vst [vmem:[%s160_s28 + $0x8] sm:$0xff] (%p68_p3), %v178_v1  ;;  %v182_v3 = vld [vmem:[%s163_s27 + $0x28] sm:$0xff] (%p68_p3) }
  0x12   : > { %181 = vst [vmem:[%s160_s28 + $0x10] sm:$0xff] %v180_v2  ;;  %v184_v4 = vld [vmem:[%s163_s27 + $0x40] sm:$0xff]  ;;  %v186_v5 = vld [vmem:[%s163_s27 + $0x48] sm:$0xff]  ;;  %183 = vst [vmem:[%s160_s28 + $0x18] sm:$0xff] %v182_v3 }
  0x13   : > { %185 = vst [vmem:[%s160_s28 + $0x20] sm:$0xff] %v184_v4  ;;  %187 = vst [vmem:[%s160_s28 + $0x28] sm:$0xff] %v186_v5  ;;  %v188_v6 = vld [vmem:[%s163_s27 + $0x60] sm:$0xff]  ;;  %v190_v7 = vld [vmem:[%s163_s27 + $0x68] sm:$0xff] }
  0x14   : > { %189 = vst [vmem:[%s160_s28 + $0x30] sm:$0xff] %v188_v6  ;;  %191 = vst [vmem:[%s160_s28 + $0x38] sm:$0xff] %v190_v7 }
  0x15 PF: > { %p574_p6 = scmp.ge.s32.totalorder %s741_s16, 1  ;;  %p205_p7 = scmp.lt.s32.totalorder %s741_s16, 3 }
  0x17   : > { %p206_p8 = pnand %p574_p6, %p205_p7 }
  0x18   : > { %s212_s29 = sand.u32 (!%p206_p8), 1, %s725_s12   ;;  %s576_s30 = sshll.u32 (!%p206_p8), %s733_s14, 5 }
  0x19   : > { %209 = sbr.rel (%p206_p8) target bundleno = 453 (0x1c5), region = 51  ;;  %s575_s4 = sshll.u32 (!%p206_p8), %s212_s29, 6 }
  0x1a   : > { %p248_p9 = scmp.lt.s32.totalorder (!%p206_p8), %s576_s30, 63  ;;  %s214_s9 = scalar_lea.vmem (!%p206_p8), [#allocation2], %s575_s4 }
  0x1b   : > { %p578_p10 = scmp.ne.s32.totalorder (!%p206_p8), %s733_s14, 0 }
  0x1e   : > { %s908_s30 = smov (!%p248_p9, %s576_s30), 63  ;;  %257 = sbr.rel (%p578_p10) target bundleno = 37 (0x25), region = 59 }
  0x1f   : > { %s577_s5 = sshll.u32 %s908_s30, 3 }
  0x20   : > { %s819_s8 = scalar_lea.vmem %s898_s2, %s577_s5 }
  0x23   : > { %vm258_vm0 = vcmask 261120   ;;  %v743_v8 = vmov 0.0  }
  0x24   : > { %259 = vst.msk [vmem:[#allocation3] sm:$0xff] %vm258_vm0, %v743_v8  ;;  %260 = vst.msk [vmem:[#allocation3 + $0x8] sm:$0xff] %vm258_vm0, %v743_v8 }
  0x25 PF: > { %v270_v9 = vld [vmem:[%s214_s9 + $0x38] sm:$0xff]  ;;  %v269_v10 = vld [vmem:[%s214_s9 + $0x30] sm:$0xff]  ;;  %v268_v11 = vld [vmem:[%s214_s9 + $0x28] sm:$0xff]  ;;  %v744_v13 = vmov 0.0   ;;  %vm271_vm1 = vcmask 261120   ;;  %s745_s19 = smov [#allocation3]  }
  0x26   : > { %302 = vmatprep.subr.mxu0 %v270_v9  ;;  %v267_v12 = vld [vmem:[%s214_s9 + $0x20] sm:$0xff]  ;;  %342 = vmatprep.mubr.f32.mxu0 %v744_v13  ;;  %v266_v14 = vld [vmem:[%s214_s9 + $0x18] sm:$0xff]  ;;  %v265_v15 = vld [vmem:[%s214_s9 + $0x10] sm:$0xff]  ;;  %s481_s20 = sshll.u32 %s745_s19, 4  ;;  %p865_p11 = scmp.eq.s32.totalorder %s567_s17, 1  ;;  %s482_s20 = int_to_ptr.vmem [resolvable:$true] %s481_s20 }
  0x27   : > { %303 = vmatpush1.msra.mxu0 %v269_v10  ;;  %v392_v16 = vld [vmem:[%s819_s8 + $0xf8] sm:$0xff]  ;;  %v264_v18 = vld [vmem:[%s214_s9 + $0x8] sm:$0xff]  ;;  %v391_v19 = vld [vmem:[%s819_s8 + $0xf0] sm:$0xff]  ;;  %s675_s23 = scalar_lea.vmem %s482_s20, 256  ;;  %p682_p1 = scmp.lt.s32.totalorder %s482_s20, %s482_s20 }
  0x28   : > { %304 = vmatprep.subr.mxu0 %v268_v11  ;;  %v376_v17 = vld [vmem:[%s819_s8 + $0x78] sm:$0xff]  ;;  %586 = vmatprep.subr.mxu1 %v392_v16  ;;  %v375_v20 = vld [vmem:[%s819_s8 + $0x70] sm:$0xff]  ;;  %v263_v21 = vld [vmem:[%s214_s9] sm:$0xff]  ;;  %p676_p12 = scmp.ne.s32.totalorder %s482_s20, %s675_s23  ;;  %p683_p2 = scmp.lt.s32.totalorder %s675_s23, %s675_s23 }
  0x29   : > { %305 = vmatpush1.msra.mxu0 %v267_v12  ;;  %587 = vmatpush3.msra.mxu1 %v376_v17  ;;  %v390_v22 = vld [vmem:[%s819_s8 + $0xe8] sm:$0xff]  ;;  %v261_v23 = vld [vmem:[%s896_s0] sm:$0xff]  ;;  %v388_v27 = vld [vmem:[%s819_s8 + $0xd8] sm:$0xff] }
  0x2a   : > { %306 = vmatprep.subr.mxu0 %v266_v14  ;;  %588 = vmatprep.subr.mxu1 %v391_v19  ;;  %v374_v24 = vld [vmem:[%s819_s8 + $0x68] sm:$0xff]  ;;  %v389_v25 = vld [vmem:[%s819_s8 + $0xe0] sm:$0xff]  ;;  %v372_v29 = vld [vmem:[%s819_s8 + $0x58] sm:$0xff]  ;;  %p677_p13 = pnand %p676_p12, %p865_p11  ;;  %p684_p3 = por %p683_p2, %p682_p1 }
  0x2b   : > { %307 = vmatpush1.msra.mxu0 %v265_v15  ;;  %589 = vmatpush3.msra.mxu1 %v375_v20  ;;  %v373_v26 = vld [vmem:[%s819_s8 + $0x60] sm:$0xff]  ;;  %v262_v28 = vld [vmem:[%s896_s0 + $0x8] sm:$0xff]  ;;  %v387_v30 = vld [vmem:[%s819_s8 + $0xd0] sm:$0xff] }
  0x2c   : > { %308 = vmatprep.subr.mxu0 %v264_v18  ;;  %590 = vmatprep.subr.mxu1 %v390_v22  ;;  %v371_v31 = vld [vmem:[%s819_s8 + $0x50] sm:$0xff]  ;;  %v386_v32 = vld [vmem:[%s819_s8 + $0xc8] sm:$0xff]  ;;  %v385_v34 = vld [vmem:[%s819_s8 + $0xc0] sm:$0xff]  ;;  %p678_p0 = pneg %p677_p13 }
  0x2d   : > { %309 = vmatpush1.msra.mxu0 %v263_v21  ;;  %591 = vmatpush3.msra.mxu1 %v374_v24  ;;  %v370_v33 = vld [vmem:[%s819_s8 + $0x48] sm:$0xff]  ;;  %v369_v35 = vld [vmem:[%s819_s8 + $0x40] sm:$0xff]  ;;  %v384_v36 = vld [vmem:[%s819_s8 + $0xb8] sm:$0xff] }
  0x2e   : > { %579 = vmatmul.mubr.msk.f32.vlgmr.msra.gmra.mxu0 %vm271_vm1, %v261_v23  ;;  %592 = vmatprep.subr.mxu1 %v389_v25  ;;  %v368_v37 = vld [vmem:[%s819_s8 + $0x38] sm:$0xff]  ;;  %v383_v38 = vld [vmem:[%s819_s8 + $0xb0] sm:$0xff]  ;;  %v382_v40 = vld [vmem:[%s819_s8 + $0xa8] sm:$0xff]  ;;  %p685_p4 = pnand %p684_p3, %p678_p0 }
  0x2f   : > { %348 = vmatprep.mubr.f32.mxu0 %v744_v13  ;;  %593 = vmatpush3.msra.mxu1 %v373_v26  ;;  %v367_v39 = vld [vmem:[%s819_s8 + $0x30] sm:$0xff]  ;;  %v366_v41 = vld [vmem:[%s819_s8 + $0x28] sm:$0xff]  ;;  %v381_v42 = vld [vmem:[%s819_s8 + $0xa0] sm:$0xff] }
  0x30   : > { %594 = vmatprep.subr.mxu1 %v388_v27  ;;  %v365_v43 = vld [vmem:[%s819_s8 + $0x20] sm:$0xff]  ;;  %v380_v44 = vld [vmem:[%s819_s8 + $0x98] sm:$0xff]  ;;  %v379_v46 = vld [vmem:[%s819_s8 + $0x90] sm:$0xff] }
  0x31   : > { %595 = vmatpush3.msra.mxu1 %v372_v29  ;;  %v364_v45 = vld [vmem:[%s819_s8 + $0x18] sm:$0xff]  ;;  %v363_v47 = vld [vmem:[%s819_s8 + $0x10] sm:$0xff]  ;;  %v378_v48 = vld [vmem:[%s819_s8 + $0x88] sm:$0xff] }
  0x32   : > { %580 = vmatmul.mubr.msk.f32.gmra.mxu0 %vm271_vm1, %v262_v28  ;;  %596 = vmatprep.subr.mxu1 %v387_v30  ;;  %v362_v49 = vld [vmem:[%s819_s8 + $0x8] sm:$0xff]  ;;  %v377_v50 = vld [vmem:[%s819_s8 + $0x80] sm:$0xff] }
  0x33   : > { %597 = vmatpush3.msra.mxu1 %v371_v31  ;;  %v361_v51 = vld [vmem:[%s819_s8] sm:$0xff]  ;;  %v360_v2 = vld [vmem:[#allocation3 + $0x8] sm:$0xff] }
  0x34   : > { %598 = vmatprep.subr.mxu1 %v386_v32  ;;  %v359_v61 = vld [vmem:[#allocation3] sm:$0xff] }
  0x35   : > { %599 = vmatpush3.msra.mxu1 %v370_v33 }
  0x36   : > { %600 = vmatprep.subr.mxu1 %v385_v34 }
  0x37   : > { %601 = vmatpush3.msra.mxu1 %v369_v35 }
  0x38   : > { %602 = vmatprep.subr.mxu1 %v384_v36 }
  0x39   : > { %603 = vmatpush3.msra.mxu1 %v368_v37 }
  0x3a   : > { %604 = vmatprep.subr.mxu1 %v383_v38 }
  0x3b   : > { %605 = vmatpush3.msra.mxu1 %v367_v39 }
  0x3c   : > { %606 = vmatprep.subr.mxu1 %v382_v40 }
  0x3d   : > { %607 = vmatpush3.msra.mxu1 %v366_v41 }
  0x3e   : > { %608 = vmatprep.subr.mxu1 %v381_v42 }
  0x3f   : > { %609 = vmatpush3.msra.mxu1 %v365_v43 }
  0x40   : > { %610 = vmatprep.subr.mxu1 %v380_v44 }
  0x41   : > { %611 = vmatpush3.msra.mxu1 %v364_v45 }
  0x42   : > { %612 = vmatprep.subr.mxu1 %v379_v46 }
  0x43   : > { %613 = vmatpush3.msra.mxu1 %v363_v47 }
  0x44   : > { %614 = vmatprep.subr.mxu1 %v378_v48 }
  0x45   : > { %615 = vmatpush3.msra.mxu1 %v362_v49 }
  0x46   : > { %616 = vmatprep.subr.mxu1 %v377_v50 }
  0x47   : > { %617 = vmatpush3.msra.mxu1 %v361_v51 }
  0xee   : > { %v344_v52 = vpop.f32.mrf.mxu0 }
  0xef   : > { %v355_v55 = vmax.f32 %v344_v52, 0.0 }
  0xf0   : > { %v346_v53 = vpop.f32.mrf.mxu0 }
  0xf1   : > { %v356_v54 = vmax.f32 %v346_v53, 0.0 }
  0xf2   : > { %v350_v56 = vpop.f32.mrf.mxu0 }
  0xf3   : > { %457 = vmatprep.mubr.f32.mxu1 %v356_v54  ;;  %v357_v59 = vmax.f32 %v350_v56, 0.0 }
  0xf4   : > { %v352_v57 = vpop.f32.mrf.mxu0  ;;  %458 = vmatmul.mubr.f32.vlgmr.msra.gmra.mxu1 %v355_v55 }
  0xf5   : > { %v358_v58 = vmax.f32 %v352_v57, 0.0 }
  0xf7   : > { %462 = vmatprep.mubr.f32.mxu1 %v358_v58 }
  0xf8   : > { %463 = vmatmul.mubr.f32.gmra.mxu1 %v357_v59 }
 0x1b4   : > { %v618_v60 = vpop.f32.mrf.mxu1 }
 0x1b6   : > { %v619_v62 = vpop.f32.mrf.mxu1 }
 0x1b7   : > { %v620_v63 = vadd.f32 %v619_v62, %v618_v60 }
 0x1b8   : > { %v621_v0 = vpop.f32.mrf.mxu1 }
 0x1b9   : > { %v468_v1 = vadd.f32 %v620_v63, %v359_v61 }
 0x1ba   : > { %v622_v3 = vpop.f32.mrf.mxu1 }
 0x1bb   : > { %470 = vst.msk [vmem:[#allocation3] sm:$0xff] %vm271_vm1, %v468_v1  ;;  %v623_v4 = vadd.f32 %v622_v3, %v621_v0 }
 0x1bd   : > { %v469_v5 = vadd.f32 %v623_v4, %v360_v2 }
 0x1bf   : > { %471 = vst.msk [vmem:[#allocation3 + $0x8] sm:$0xff] %vm271_vm1, %v469_v5 }
 0x1c0   : > { %688 = shalt.err (!%p685_p4)
}
 0x1c1   : > { %s746_s24 = smov 128   ;;  %s747_s17 = smov 8  }
 0x1c2   : > { %625 = dma.vmem_to_hbm [thread:$0]  (%p865_p11), %s482_s20, 256, %s899_s3, [#allocation4], %s746_s24, %s746_s24, %s747_s17  }
 0x1c3   : > { %720 = dma.done.wait (%p865_p11), [#allocation4], 256  }
 0x1c4   : > { %722 = vsyncadd (%p865_p11), [#allocation4], 4294967040 }
 0x1c5 PF: > { %s14_s16 = sadd.s32 1, %s741_s16   ;;  %s901_s12 = smov %s729_s13 }
 0x1c6   : > { %p11_p5 = scmp.ge.s32.totalorder %s14_s16, 4   ;;  %s902_s13 = smov %s804_s21 }
 0x1c7   : > { %s903_s14 = smov %s737_s15  ;;  %s904_s15 = smov %s906_s18 }
 0x1c8   :  { %13 = sbr.rel (!%p11_p5) target bundleno = 3 (0x3), region = 98 }
 0x1cd   :  { %497 = vsyncpa [#allocation4], 1 }
 0x1ce   :  { %499 = vsyncpa [#allocation4 + $0x1], 1 }

</bundles_post_ra>
